<compile_context>
chip_gen: v6e
topology: v6e:2x2x1
jax: 0.10.0
libtpu: 0.0.40
codegen_flags: <defaults>
</compile_context>

<pallas_src>
import jax
import jax.numpy as jnp
from jax.experimental import pallas as pl
from jax.experimental.pallas import tpu as pltpu

_LANE = 128              # vreg lane width
_SUBLANE = 8             # vreg sublane count -> fixed row tile
_MAX_BLOCK_BYTES = 2 << 20  # ~2 MiB per input per grid step (x2 inputs x2 bufs)


def _round_up(x, m):
    return -(-x // m) * m


def _choose_split(n, d):
    """Split each sample's flattened pixels over `split` rows so the row count
    fills the 8 vreg sublanes (avoids streaming zero-padded rows for small N)."""
    if n % _SUBLANE == 0:
        return 1
    candidates = [s for s in (2, 4, 8) if d % s == 0]
    for s in candidates:
        if (n * s) % _SUBLANE == 0:
            return s
    return candidates[-1] if candidates else 1


def _pad2d(x, rows_pad, cols_pad):
    r, c = x.shape
    if r == rows_pad and c == cols_pad:
        return x
    # Zero padding: identical zeros in both images -> contributes 0 to the SSE.
    return jnp.pad(x, ((0, rows_pad - r), (0, cols_pad - c)))


def _sse_kernel(a_ref, b_ref, acc_ref):
    """Per-row, lane-resident sum of squared differences, streamed over D tiles.

    a_ref/b_ref: (8, td) blocks (native dtype).
    acc_ref:     (8, acc_w) f32 output block; same block index across the D
                 axis, so it stays resident in VMEM and acts as the accumulator.
    """
    k = pl.program_id(1)

    @pl.when(k == 0)
    def _init():
        acc_ref[...] = jnp.zeros_like(acc_ref)

    td = a_ref.shape[1]
    acc_w = acc_ref.shape[1]
    num_chunks = td // acc_w  # static

    # Pure-VPU accumulation over aligned, static lane chunks of the refs
    # (no big (8, td) f32 temporaries, no cross-lane reduce in the kernel).
    acc = acc_ref[...]
    for j in range(num_chunks):
        sl = slice(j * acc_w, (j + 1) * acc_w)
        da = a_ref[:, sl].astype(jnp.float32)   # upcast after the load
        db = b_ref[:, sl].astype(jnp.float32)
        dd = da - db
        acc = acc + dd * dd
    acc_ref[...] = acc


def psnr(img1, img2):
    """img1, img2: (N, C, H, W) arrays (any float/int dtype).
    Returns scalar f32 mean PSNR over the batch (matches the PyTorch module)."""
    assert img1.shape == img2.shape, (img1.shape, img2.shape)
    n = int(img1.shape[0])
    d = 1
    for s in img1.shape[1:]:
        d *= int(s)

    split = _choose_split(n, d)
    rows, rd = n * split, d // split

    # Keep the source dtype: the kernel upcasts after the load, so narrow
    # inputs (bf16 / u8) are streamed from HBM at their native width.
    a = jnp.asarray(img1).reshape(rows, rd)
    b = jnp.asarray(img2).reshape(rows, rd)

    # Lane tile: whole (128-padded) row if it fits in one tile, else a tile
    # sized so each input block is ~_MAX_BLOCK_BYTES, halved while the padding
    # waste would exceed ~6%.  Row tile = 8 sublanes.
    itemsize = jnp.dtype(a.dtype).itemsize
    max_td = max(_LANE,
                 (_MAX_BLOCK_BYTES // (_SUBLANE * itemsize)) // _LANE * _LANE)
    rd_128 = _round_up(rd, _LANE)
    if rd_128 <= max_td:
        td = rd_128
    else:
        td = max_td
        while td > 2048 and _round_up(rd_128, td) - rd_128 > rd_128 // 16:
            td //= 2
    rd_pad = _round_up(rd_128, td)
    tr = _SUBLANE
    rows_pad = _round_up(rows, tr)

    # Width of the lane-resident accumulator / output block (must divide td,
    # multiple of 128 -> unmasked lane-dense stores).
    acc_w = 512 if td % 512 == 0 else (256 if td % 256 == 0 else _LANE)

    a = _pad2d(a, rows_pad, rd_pad)
    b = _pad2d(b, rows_pad, rd_pad)

    grid = (rows_pad // tr, rd_pad // td)

    sse_lanes = pl.pallas_call(
        _sse_kernel,
        out_shape=jax.ShapeDtypeStruct((rows_pad, acc_w), jnp.float32),
        grid=grid,
        in_specs=[
            pl.BlockSpec((tr, td), lambda i, k: (i, k)),
            pl.BlockSpec((tr, td), lambda i, k: (i, k)),
        ],
        # Same block index across k -> VMEM-resident accumulator; written back
        # to HBM only once per row tile.
        out_specs=pl.BlockSpec((tr, acc_w), lambda i, k: (i, 0)),
        compiler_params=pltpu.CompilerParams(
            # Row axis shards across TensorCores (megacore);
            # D axis is the sequential streaming reduction.
            dimension_semantics=("parallel", "arbitrary")),
    )(a, b)

    # Tiny epilogue on O(N) floats: lane reduce -> per-sample MSE -> PSNR -> mean.
    per_row = jnp.sum(sse_lanes[:rows], axis=1)
    per_sample_sse = per_row.reshape(n, split).sum(axis=1)
    mse = per_sample_sse * (1.0 / d)
    return jnp.mean(-10.0 * jnp.log10(mse))


def psnr_ref(img1, img2):
    """Pure-JAX reference matching the PyTorch module."""
    x = jnp.asarray(img1, dtype=jnp.float32)
    y = jnp.asarray(img2, dtype=jnp.float32)
    axes = tuple(range(1, x.ndim))
    mse = jnp.mean((x - y) ** 2, axis=axes)
    return jnp.mean(-10.0 * jnp.log10(mse))


if __name__ == "__main__":
    key = jax.random.PRNGKey(0)
    k1, k2 = jax.random.split(key)
    # Small shapes consistent with the N*C*H*W forward contract.
    N, C, H, W = 2, 4, 16, 16
    img1 = jax.random.uniform(k1, (N, C, H, W), dtype=jnp.float32)
    img2 = jax.random.uniform(k2, (N, C, H, W), dtype=jnp.float32)

    out = jax.block_until_ready(psnr(img1, img2))
    ref = jax.block_until_ready(psnr_ref(img1, img2))

    assert jnp.allclose(out, ref, rtol=1e-5, atol=1e-5), (out, ref)
    print("KERNEL_OK")
</pallas_src>

<mosaic_0001>
module attributes {stable_mosaic.version = 11 : i64} {
  func.func @_sse_kernel(%arg0: i32, %arg1: i32, %arg2: memref<8x256xf32, #tpu.memory_space<vmem>>, %arg3: memref<8x256xf32, #tpu.memory_space<vmem>>, %arg4: memref<8x256xf32, #tpu.memory_space<vmem>>) attributes {dimension_semantics = [#tpu.dimension_semantics<parallel>, #tpu.dimension_semantics<arbitrary>], iteration_bounds = array<i64: 1, 1>, scalar_prefetch = 0 : i64, scratch_operands = 0 : i64, tpu.core_type = #tpu.core_type<tc>, window_params = [{transform_indices = @transform_0, window_bounds = array<i64: 8, 256>}, {transform_indices = @transform_1, window_bounds = array<i64: 8, 256>}, {transform_indices = @transform_2, window_bounds = array<i64: 8, 256>}]} {
    %c0_i32 = arith.constant 0 : i32
    %0 = arith.cmpi eq, %arg1, %c0_i32 : i32
    %1 = arith.extui %0 : i1 to i32
    %c0_i32_0 = arith.constant 0 : i32
    %2 = arith.cmpi ne, %1, %c0_i32_0 : i32
    scf.if %2 {
      %cst = arith.constant 0.000000e+00 : f32
      %10 = vector.broadcast %cst : f32 to vector<8x256xf32>
      %c0_8 = arith.constant 0 : index
      %c0_9 = arith.constant 0 : index
      %11 = vector.load %arg4[%c0_8, %c0_9] : memref<8x256xf32, #tpu.memory_space<vmem>>, vector<8x256xf32>
      tpu.vector_store %arg4[%c0_8, %c0_9], %10 {strides = array<i32>} : memref<8x256xf32, #tpu.memory_space<vmem>>, vector<8x256xf32>,
    } else {
    }
    %c0 = arith.constant 0 : index
    %c0_1 = arith.constant 0 : index
    %3 = vector.load %arg4[%c0, %c0_1] : memref<8x256xf32, #tpu.memory_space<vmem>>, vector<8x256xf32>
    %c0_2 = arith.constant 0 : index
    %c0_3 = arith.constant 0 : index
    %4 = vector.load %arg2[%c0_2, %c0_3] : memref<8x256xf32, #tpu.memory_space<vmem>>, vector<8x256xf32>
    %c0_4 = arith.constant 0 : index
    %c0_5 = arith.constant 0 : index
    %5 = vector.load %arg3[%c0_4, %c0_5] : memref<8x256xf32, #tpu.memory_space<vmem>>, vector<8x256xf32>
    %6 = arith.subf %4, %5 : vector<8x256xf32>
    %7 = arith.mulf %6, %6 : vector<8x256xf32>
    %8 = arith.addf %3, %7 : vector<8x256xf32>
    %c0_6 = arith.constant 0 : index
    %c0_7 = arith.constant 0 : index
    %9 = vector.load %arg4[%c0_6, %c0_7] : memref<8x256xf32, #tpu.memory_space<vmem>>, vector<8x256xf32>
    tpu.vector_store %arg4[%c0_6, %c0_7], %8 {strides = array<i32>} : memref<8x256xf32, #tpu.memory_space<vmem>>, vector<8x256xf32>,
    return
  }
  func.func @transform_0(%arg0: i32, %arg1: i32) -> (i32, i32) {
    %c0_i32 = arith.constant 0 : i32
    return %arg0, %arg1 : i32, i32
  }
  func.func @transform_1(%arg0: i32, %arg1: i32) -> (i32, i32) {
    %c0_i32 = arith.constant 0 : i32
    return %arg0, %arg1 : i32, i32
  }
  func.func @transform_2(%arg0: i32, %arg1: i32) -> (i32, i32) {
    %c0_i32 = arith.constant 0 : i32
    %c0_i32_0 = arith.constant 0 : i32
    return %arg0, %c0_i32 : i32, i32
  }
}

</mosaic_0001>

<bundles_post_ra>
// kernel: tpu_custom_call.1
= control target key start
LH: loop header
LB: loop body
LE: loop exit
PB: predicated region body
PF: predicated region fallthrough
CT: control target
= control target key end

     0   :  { %7 = vsyncpa [#allocation3], 0  ;;  %s169_s0 = inlined_call_operand.hbm [shape: f32[8,256], index: 0, kind: input, shape index: {}]   ;;  %s170_s1 = inlined_call_operand.hbm [shape: f32[8,256], index: 1, kind: input, shape index: {}]   ;;  %s171_s2 = inlined_call_operand.hbm [shape: f32[8,256], index: 2, kind: output, shape index: {}]  }
   0x1   :  { %8 = vsyncpa [#allocation6], 0 }
   0x2   :  { %9 = vsyncpa [#allocation4], 0  ;;  %s142_s9 = smov [#allocation2]   ;;  %s143_s11 = smov [#allocation5]  }
   0x3   :  { %s16_s10 = sshll.u32 %s142_s9, 4  ;;  %s26_s12 = sshll.u32 %s143_s11, 4  ;;  %s17_s10 = int_to_ptr.vmem [resolvable:$true] %s16_s10  ;;  %s27_s12 = int_to_ptr.vmem [resolvable:$true] %s26_s12 }
   0x4   :  { %s84_s13 = scalar_lea.vmem %s17_s10, 256  ;;  %p89_p1 = scmp.lt.s32.totalorder %s17_s10, %s17_s10 }
   0x5   :  { %p85_p0 = scmp.ne.s32.totalorder %s17_s10, %s84_s13  ;;  %p90_p2 = scmp.lt.s32.totalorder %s84_s13, %s84_s13 }
   0x7   :  { %p91_p3 = por %p90_p2, %p89_p1 }
   0x9   :  { %p92_p4 = pnand %p91_p3, %p85_p0 }
   0xb   :  { %95 = shalt.err (!%p92_p4)
}
   0xc   :  { %19 = dma.hbm_to_vmem [thread:$0]  %s169_s0, 256, %s17_s10, [#allocation3]  }
   0xd   :  { %s104_s16 = scalar_lea.vmem %s27_s12, 256  ;;  %p109_p6 = scmp.lt.s32.totalorder %s27_s12, %s27_s12 }
   0xe   :  { %p105_p5 = scmp.ne.s32.totalorder %s27_s12, %s104_s16  ;;  %p110_p7 = scmp.lt.s32.totalorder %s104_s16, %s104_s16 }
  0x10   :  { %p111_p8 = por %p110_p7, %p109_p6 }
  0x12   :  { %p112_p9 = pnand %p111_p8, %p105_p5 }
  0x14   :  { %115 = shalt.err (!%p112_p9)
}
  0x15   :  { %29 = dma.hbm_to_vmem [thread:$0]  %s170_s1, 256, %s27_s12, [#allocation6]  }
  0x16   :  { %136 = dma.done.wait [#allocation3], 256  }
  0x17   :  { %137 = vsyncadd [#allocation3], 4294967040 }
  0x18   :  { %138 = dma.done.wait [#allocation6], 256  }
  0x19   :  { %139 = vsyncadd [#allocation6], 4294967040  ;;  %v44_v0 = vld [vmem:[#allocation2] sm:$0xff]  ;;  %v46_v1 = vld [vmem:[#allocation5] sm:$0xff]  ;;  %s144_s0 = smov [#allocation7]  }
  0x1a   :  { %v45_v2 = vld [vmem:[#allocation2 + $0x8] sm:$0xff]  ;;  %v48_v3 = vsub.f32 %v44_v0, %v46_v1  ;;  %v47_v4 = vld [vmem:[#allocation5 + $0x8] sm:$0xff]  ;;  %s62_s19 = sshll.u32 %s144_s0, 4  ;;  %s63_s19 = int_to_ptr.vmem [resolvable:$true] %s62_s19 }
  0x1b   :  { %v49_v5 = vsub.f32 %v45_v2, %v47_v4  ;;  %s116_s20 = scalar_lea.vmem %s63_s19, 256  ;;  %p121_p11 = scmp.lt.s32.totalorder %s63_s19, %s63_s19 }
  0x1c   :  { %v50_v6 = vmul.f32 %v48_v3, %v48_v3  ;;  %p117_p10 = scmp.ne.s32.totalorder %s63_s19, %s116_s20  ;;  %p122_p12 = scmp.lt.s32.totalorder %s116_s20, %s116_s20 }
  0x1d   :  { %v51_v7 = vmul.f32 %v49_v5, %v49_v5 }
  0x1e   :  { %54 = vst [vmem:[#allocation7] sm:$0xff] %v50_v6  ;;  %p123_p13 = por %p122_p12, %p121_p11 }
  0x1f   :  { %55 = vst [vmem:[#allocation7 + $0x8] sm:$0xff] %v51_v7 }
  0x20   :  { %p124_p0 = pnand %p123_p13, %p117_p10 }
  0x22   :  { %127 = shalt.err (!%p124_p0)
}
  0x23   :  { %65 = dma.vmem_to_hbm [thread:$0]  %s63_s19, 256, %s171_s2, [#allocation4]  }
  0x24   :  { %140 = dma.done.wait [#allocation4], 256  }
  0x25   :  { %141 = vsyncadd [#allocation4], 4294967040 }
  0x26   :  { %69 = vsyncpa [#allocation3], 1 }
  0x27   :  { %70 = vsyncpa [#allocation6], 1 }
  0x28   :  { %71 = vsyncpa [#allocation4], 1 }

</bundles_post_ra>
